<compile_context>
chip_gen: v7x
topology: tpu7x:2x2x1
jax: 0.10.0
libtpu: 0.0.40
codegen_flags: <defaults>
</compile_context>

<pallas_src>
import jax
import jax.numpy as jnp
from jax.experimental import pallas as pl
from jax.experimental.pallas import tpu as pltpu


# ----------------------------------------------------------------------------
# Kernel
# ----------------------------------------------------------------------------
def encoder_kernel(x_ref, w1_ref, b1_ref, w2_ref, b2_ref, mu_ref):
    # x_ref : (TB, D_in)    input dtype (e.g. f32)
    # w1_ref: (D_in, H_pad) compute dtype (f32 or bf16) -- fc weight, transposed
    # b1_ref: (1, H_pad)    f32
    # w2_ref: (H_pad, L)    compute dtype -- fc_mu weight, transposed
    # b2_ref: (1, L)        f32
    # mu_ref: (TB, L)       output dtype
    cdt = w1_ref.dtype
    x = x_ref[...].astype(cdt)                                   # in-kernel cast
    h = jnp.dot(x, w1_ref[...], preferred_element_type=jnp.float32)
    h = jnp.maximum(h + b1_ref[...], 0.0)                        # bias + relu in f32
    mu = jnp.dot(h.astype(cdt), w2_ref[...],
                 preferred_element_type=jnp.float32)
    mu_ref[...] = (mu + b2_ref[...]).astype(mu_ref.dtype)


# ----------------------------------------------------------------------------
# Parameter prep (one-time: transpose / pad H / cast — hoisted out of forward)
# ----------------------------------------------------------------------------
def _round_up(n, m):
    return ((n + m - 1) // m) * m


def prepare_params(w_fc, b_fc, w_mu, b_mu, compute_dtype=jnp.bfloat16):
    """w_fc:(H,D_in), b_fc:(H,), w_mu:(L,H), b_mu:(L,) in PyTorch layout.

    Returns (in, out)-layout parameters (only H lane-padded) + logical dims.
    """
    H, D_in = w_fc.shape
    L = w_mu.shape[0]
    H_pad = _round_up(H, 128)

    w1 = jnp.zeros((D_in, H_pad), compute_dtype).at[:, :H].set(
        w_fc.T.astype(compute_dtype))
    b1 = jnp.zeros((1, H_pad), jnp.float32).at[:, :H].set(
        b_fc.astype(jnp.float32).reshape(1, H))
    w2 = jnp.zeros((H_pad, L), compute_dtype).at[:H, :].set(
        w_mu.T.astype(compute_dtype))
    b2 = b_mu.astype(jnp.float32).reshape(1, L)
    return (w1, b1, w2, b2), (D_in, H, L)


def _pick_batch_tile(B, D_in, H_pad, L, compute_itembytes, in_itembytes,
                     out_itembytes, *, max_tb=512, vmem_budget=14 * 2 ** 20,
                     min_grid=4):
    """Largest batch tile whose VMEM footprint fits and keeps >= min_grid steps."""
    # Resident weights/biases: single copy (pl.Buffered(1) on constant specs).
    weight_bytes = ((D_in * H_pad + H_pad * L) * compute_itembytes
                    + (H_pad + L) * 4)
    # Cap TB so the grid has at least `min_grid` steps when B allows it
    # (2x cores on v7x megacore + pipeline overlap on every generation).
    tb_cap = min(max_tb, max(8, _round_up(pl.cdiv(B, max(min_grid, 1)), 8)))
    candidates = [c for c in (512, 256, 128, 64, 32, 16, 8) if c <= tb_cap] or [8]
    fit = candidates[-1]
    for cand in candidates:
        tile_bytes = (2 * cand * (D_in * in_itembytes + L * out_itembytes)  # 2x-buffered x/out tiles
                      + cand * H_pad * 4                                    # f32 h intermediate
                      + cand * L * 4)                                       # f32 mu accumulator
        if weight_bytes + tile_bytes <= vmem_budget:
            fit = cand
            break
    return min(fit, _round_up(B, 8))


def _buffered_weight_kwargs():
    """pipeline_mode=pl.Buffered(1) for constant-index blocks, if supported."""
    try:
        pl.BlockSpec((8, 128), lambda i: (0, 0), pipeline_mode=pl.Buffered(1))
        return {"pipeline_mode": pl.Buffered(1)}
    except Exception:
        return {}


# ----------------------------------------------------------------------------
# Forward
# ----------------------------------------------------------------------------
def encoder_forward(x, params, dims, *, max_block_b=512,
                    vmem_budget=14 * 2 ** 20, min_grid=4):
    """x: (..., input_dim). params/dims from prepare_params. Returns (mu, None)."""
    w1, b1, w2, b2 = params
    D_in, H, L = dims
    lead_shape = x.shape[:-1]
    x2 = x.reshape(-1, D_in)
    B = x2.shape[0]
    H_pad = w1.shape[1]
    cdt = w1.dtype
    out_dtype = x.dtype

    TB = _pick_batch_tile(B, D_in, H_pad, L,
                          jnp.dtype(cdt).itemsize,
                          jnp.dtype(x.dtype).itemsize,
                          jnp.dtype(out_dtype).itemsize,
                          max_tb=max_block_b, vmem_budget=vmem_budget,
                          min_grid=min_grid)
    B_pad = _round_up(B, TB)

    # Batch-only pad (no lane pad on D); skipped entirely when B % TB == 0.
    # Padded rows produce mu == b2 and are sliced off below.
    x_in = x2 if B_pad == B else jnp.pad(x2, ((0, B_pad - B), (0, 0)))

    wkw = _buffered_weight_kwargs()

    compiler_kwargs = dict(dimension_semantics=("parallel",))
    if vmem_budget > 14 * 2 ** 20:
        # Safe ceiling on every generation (v7x has only 64 MiB physical VMEM).
        compiler_kwargs["vmem_limit_bytes"] = min(48 * 2 ** 20,
                                                  int(vmem_budget) + (8 << 20))

    mu_p = pl.pallas_call(
        encoder_kernel,
        out_shape=jax.ShapeDtypeStruct((B_pad, L), out_dtype),
        grid_spec=pltpu.PrefetchScalarGridSpec(
            num_scalar_prefetch=0,
            grid=(B_pad // TB,),
            in_specs=[
                pl.BlockSpec((TB, D_in), lambda i: (i, 0)),            # x tile (streamed)
                pl.BlockSpec((D_in, H_pad), lambda i: (0, 0), **wkw),  # w1 (resident)
                pl.BlockSpec((1, H_pad), lambda i: (0, 0), **wkw),     # b1 (resident)
                pl.BlockSpec((H_pad, L), lambda i: (0, 0), **wkw),     # w2 (resident)
                pl.BlockSpec((1, L), lambda i: (0, 0), **wkw),         # b2 (resident)
            ],
            out_specs=pl.BlockSpec((TB, L), lambda i: (i, 0)),
        ),
        compiler_params=pltpu.CompilerParams(**compiler_kwargs),
    )(x_in, w1, b1, w2, b2)

    mu = mu_p if B_pad == B else mu_p[:B]
    mu = mu.reshape(*lead_shape, L)
    return mu, None
    # TODO(synk): for very large hidden_dim (resident w1+w2 > ~20-40 MiB) add a
    # second 'arbitrary' grid axis over H_pad chunks with a pl.when-initialized
    # f32 accumulator instead of fully-resident weights.


# ----------------------------------------------------------------------------
# Deterministic init mimicking nn.Linear (uniform(-1/sqrt(fan_in), 1/sqrt(fan_in)))
# ----------------------------------------------------------------------------
def init_params(key, input_dim, hidden_dim, latent_dim, dtype=jnp.float32):
    k1, k2, k3, k4 = jax.random.split(key, 4)
    lim1 = 1.0 / jnp.sqrt(input_dim)
    lim2 = 1.0 / jnp.sqrt(hidden_dim)
    w_fc = jax.random.uniform(k1, (hidden_dim, input_dim), dtype, -lim1, lim1)
    b_fc = jax.random.uniform(k2, (hidden_dim,), dtype, -lim1, lim1)
    w_mu = jax.random.uniform(k3, (latent_dim, hidden_dim), dtype, -lim2, lim2)
    b_mu = jax.random.uniform(k4, (latent_dim,), dtype, -lim2, lim2)
    return w_fc, b_fc, w_mu, b_mu


if __name__ == "__main__":
    key = jax.random.PRNGKey(0)
    input_dim, hidden_dim, latent_dim = 32, 64, 16
    batch = 8

    kx, kp = jax.random.split(key)
    x = jax.random.normal(kx, (batch, input_dim), jnp.float32)
    w_fc, b_fc, w_mu, b_mu = init_params(kp, input_dim, hidden_dim, latent_dim)

    # Pure-JAX reference of the same forward pass.
    h_ref = jnp.maximum(x @ w_fc.T + b_fc, 0.0)
    mu_ref = h_ref @ w_mu.T + b_mu

    # f32 compute path — must match the reference tightly.
    params32, dims32 = prepare_params(w_fc, b_fc, w_mu, b_mu,
                                      compute_dtype=jnp.float32)
    mu32, logvar = encoder_forward(x, params32, dims32)
    mu32 = jax.block_until_ready(mu32)
    assert mu32.shape == (batch, latent_dim)
    assert logvar is None
    assert jnp.allclose(mu32, mu_ref, atol=1e-5, rtol=1e-5)

    # bf16 MXU path (f32 accumulation, default) — fast path, looser tolerance
    # since both x and the h intermediate are requantized to bf16.
    params16, dims16 = prepare_params(w_fc, b_fc, w_mu, b_mu)   # bf16 default
    mu16, _ = encoder_forward(x, params16, dims16)
    mu16 = jax.block_until_ready(mu16)
    assert mu16.shape == (batch, latent_dim)
    assert jnp.allclose(mu16, mu_ref, atol=5e-2, rtol=5e-2)

    # Exercise the batch-remainder path (B not a multiple of the tile/8).
    x_odd = jax.random.normal(kx, (5, input_dim), jnp.float32)
    mu_odd, _ = encoder_forward(x_odd, params32, dims32)
    mu_odd = jax.block_until_ready(mu_odd)
    ref_odd = jnp.maximum(x_odd @ w_fc.T + b_fc, 0.0) @ w_mu.T + b_mu
    assert mu_odd.shape == (5, latent_dim)
    assert jnp.allclose(mu_odd, ref_odd, atol=1e-5, rtol=1e-5)

    print("KERNEL_OK")
</pallas_src>

<mosaic_0001>
module attributes {stable_mosaic.version = 11 : i64} {
  func.func @encoder_kernel(%arg0: i32, %arg1: memref<8x32xf32, #tpu.memory_space<vmem>>, %arg2: memref<32x128xf32, #tpu.memory_space<vmem>>, %arg3: memref<1x128xf32, #tpu.memory_space<vmem>>, %arg4: memref<128x16xf32, #tpu.memory_space<vmem>>, %arg5: memref<1x16xf32, #tpu.memory_space<vmem>>, %arg6: memref<8x16xf32, #tpu.memory_space<vmem>>) attributes {dimension_semantics = [#tpu.dimension_semantics<parallel>], iteration_bounds = array<i64: 1>, scalar_prefetch = 0 : i64, scratch_operands = 0 : i64, tpu.core_type = #tpu.core_type<tc>, window_params = [{transform_indices = @transform_0, window_bounds = array<i64: 8, 32>}, {pipeline_mode = #tpu.pipeline_mode<synchronous>, transform_indices = @transform_1, window_bounds = array<i64: 32, 128>}, {pipeline_mode = #tpu.pipeline_mode<synchronous>, transform_indices = @transform_2, window_bounds = array<i64: 1, 128>}, {pipeline_mode = #tpu.pipeline_mode<synchronous>, transform_indices = @transform_3, window_bounds = array<i64: 128, 16>}, {pipeline_mode = #tpu.pipeline_mode<synchronous>, transform_indices = @transform_4, window_bounds = array<i64: 1, 16>}, {transform_indices = @transform_5, window_bounds = array<i64: 8, 16>}]} {
    %c0 = arith.constant 0 : index
    %c0_0 = arith.constant 0 : index
    %0 = vector.load %arg1[%c0, %c0_0] : memref<8x32xf32, #tpu.memory_space<vmem>>, vector<8x32xf32>
    %c0_1 = arith.constant 0 : index
    %c0_2 = arith.constant 0 : index
    %1 = vector.load %arg2[%c0_1, %c0_2] : memref<32x128xf32, #tpu.memory_space<vmem>>, vector<32x128xf32>
    %cst = arith.constant dense<0.000000e+00> : vector<8x128xf32>
    %2 = tpu.matmul %0, %1, %cst {dimension_numbers = #tpu.dot_dimension_numbers<[1], [0], [0], [1], [0, 0, 1, 1], [], []>} : vector<8x32xf32>, vector<32x128xf32>, vector<8x128xf32> -> vector<8x128xf32>
    %c0_3 = arith.constant 0 : index
    %c0_4 = arith.constant 0 : index
    %3 = vector.load %arg3[%c0_3, %c0_4] : memref<1x128xf32, #tpu.memory_space<vmem>>, vector<1x128xf32>
    %4 = vector.broadcast %3 : vector<1x128xf32> to vector<8x128xf32>
    %5 = arith.addf %2, %4 : vector<8x128xf32>
    %cst_5 = arith.constant 0.000000e+00 : f32
    %6 = vector.broadcast %cst_5 : f32 to vector<8x128xf32>
    %7 = arith.maximumf %5, %6 : vector<8x128xf32>
    %c0_6 = arith.constant 0 : index
    %c0_7 = arith.constant 0 : index
    %8 = vector.load %arg4[%c0_6, %c0_7] : memref<128x16xf32, #tpu.memory_space<vmem>>, vector<128x16xf32>
    %cst_8 = arith.constant dense<0.000000e+00> : vector<8x16xf32>
    %9 = tpu.matmul %7, %8, %cst_8 {dimension_numbers = #tpu.dot_dimension_numbers<[1], [0], [0], [1], [0, 0, 1, 1], [], []>} : vector<8x128xf32>, vector<128x16xf32>, vector<8x16xf32> -> vector<8x16xf32>
    %c0_9 = arith.constant 0 : index
    %c0_10 = arith.constant 0 : index
    %10 = vector.load %arg5[%c0_9, %c0_10] : memref<1x16xf32, #tpu.memory_space<vmem>>, vector<1x16xf32>
    %11 = vector.broadcast %10 : vector<1x16xf32> to vector<8x16xf32>
    %12 = arith.addf %9, %11 : vector<8x16xf32>
    %c0_11 = arith.constant 0 : index
    %c0_12 = arith.constant 0 : index
    %13 = vector.load %arg6[%c0_11, %c0_12] : memref<8x16xf32, #tpu.memory_space<vmem>>, vector<8x16xf32>
    tpu.vector_store %arg6[%c0_11, %c0_12], %12 {strides = array<i32>} : memref<8x16xf32, #tpu.memory_space<vmem>>, vector<8x16xf32>,
    return
  }
  func.func @transform_0(%arg0: i32) -> (i32, i32) {
    %c0_i32 = arith.constant 0 : i32
    %c0_i32_0 = arith.constant 0 : i32
    return %arg0, %c0_i32 : i32, i32
  }
  func.func @transform_1(%arg0: i32) -> (i32, i32) {
    %c0_i32 = arith.constant 0 : i32
    %c0_i32_0 = arith.constant 0 : i32
    %c0_i32_1 = arith.constant 0 : i32
    return %c0_i32, %c0_i32_0 : i32, i32
  }
  func.func @transform_2(%arg0: i32) -> (i32, i32) {
    %c0_i32 = arith.constant 0 : i32
    %c0_i32_0 = arith.constant 0 : i32
    %c0_i32_1 = arith.constant 0 : i32
    return %c0_i32, %c0_i32_0 : i32, i32
  }
  func.func @transform_3(%arg0: i32) -> (i32, i32) {
    %c0_i32 = arith.constant 0 : i32
    %c0_i32_0 = arith.constant 0 : i32
    %c0_i32_1 = arith.constant 0 : i32
    return %c0_i32, %c0_i32_0 : i32, i32
  }
  func.func @transform_4(%arg0: i32) -> (i32, i32) {
    %c0_i32 = arith.constant 0 : i32
    %c0_i32_0 = arith.constant 0 : i32
    %c0_i32_1 = arith.constant 0 : i32
    return %c0_i32, %c0_i32_0 : i32, i32
  }
  func.func @transform_5(%arg0: i32) -> (i32, i32) {
    %c0_i32 = arith.constant 0 : i32
    %c0_i32_0 = arith.constant 0 : i32
    return %arg0, %c0_i32 : i32, i32
  }
}

</mosaic_0001>

<bundles_post_ra>
// kernel: tpu_custom_call.1
= control target key start
LH: loop header
LB: loop body
LE: loop exit
PB: predicated region body
PF: predicated region fallthrough
CT: control target
= control target key end

     0   :  { %v346_v3 = vmov 0.0|0.0   ;;  %vm347_vm0 = vmmov 0   ;;  %v348_v6 = vmov 0.0   ;;  %s461_s0 = inlined_call_operand.vmem [shape: f32[8,32], index: 0, kind: input, shape index: {}]   ;;  %s462_s1 = inlined_call_operand.vmem [shape: f32[32,128], index: 1, kind: input, shape index: {}]   ;;  %s463_s2 = inlined_call_operand.vmem [shape: f32[1,128], index: 2, kind: input, shape index: {}]   ;;  %s464_s3 = inlined_call_operand.vmem [shape: f32[128,16], index: 3, kind: input, shape index: {}]   ;;  %s465_s4 = inlined_call_operand.vmem [shape: f32[1,16], index: 4, kind: input, shape index: {}]   ;;  %s466_s5 = inlined_call_operand.hbm [shape: f32[8,16], index: 5, kind: output, shape index: {}]  }
   0x1   :  { %v22_v0 = vld [vmem:[%s462_s1] sm:$0xff]  ;;  %v23_v1 = vld [vmem:[%s462_s1 + $0x8] sm:$0xff]  ;;  %v24_v2 = vld [vmem:[%s462_s1 + $0x10] sm:$0xff]  ;;  %288 = vmatprep.subr.bf16.mxu0 %v346_v3  ;;  %250 = vmatprep.mubr.msk.f32.mxu0 %vm347_vm0, %v348_v6 }
   0x2   :  { %v289_v4 = vpack.c.bf16 %v23_v1, %v22_v0  ;;  %v25_v5 = vld [vmem:[%s462_s1 + $0x18] sm:$0xff]  ;;  %v108_v7 = vld [vmem:[%s464_s3] sm:$0xff]  ;;  %294 = vmatprep.subr.bf16.mxu1 %v346_v3  ;;  %v109_v8 = vld [vmem:[%s464_s3 + $0x8] sm:$0xff]  ;;  %285 = vmatprep.mubr.msk.f32.mxu1 %vm347_vm0, %v348_v6 }
   0x3   :  { %v110_v9 = vld [vmem:[%s464_s3 + $0x10] sm:$0xff]  ;;  %v111_v10 = vld [vmem:[%s464_s3 + $0x18] sm:$0xff]  ;;  %v292_v11 = vpack.c.bf16 %v25_v5, %v24_v2  ;;  %v295_v12 = vpack.c.bf16 %v109_v8, %v108_v7  ;;  %v112_v14 = vld [vmem:[%s464_s3 + $0x20] sm:$0xff] }
   0x4   :  { %290 = vmatpush3.bf16.msra.mxu0 %v289_v4  ;;  %v298_v13 = vpack.c.bf16 %v111_v10, %v110_v9  ;;  %v113_v15 = vld [vmem:[%s464_s3 + $0x28] sm:$0xff] }
   0x5   :  { %291 = vmatprep.subr.bf16.mxu0 %v346_v3  ;;  %296 = vmatpush3.bf16.msra.mxu1 %v295_v12 }
   0x6   :  { %297 = vmatprep.subr.bf16.mxu1 %v346_v3 }
   0x7   :  { %10 = vsyncpa [#allocation3], 0  ;;  %v21_v16 = vld [vmem:[%s461_s0] sm:$0xff]  ;;  %vm33_vm1 = vcmask 261120   ;;  %v301_v17 = vpack.c.bf16 %v113_v15, %v112_v14  ;;  %v114_v18 = vld [vmem:[%s464_s3 + $0x30] sm:$0xff]  ;;  %s349_s11 = smov [#allocation2]  }
   0x8   :  { %293 = vmatpush3.bf16.msra.mxu0 %v292_v11  ;;  %v115_v19 = vld [vmem:[%s464_s3 + $0x38] sm:$0xff]  ;;  %v116_v21 = vld [vmem:[%s464_s3 + $0x40] sm:$0xff]  ;;  %v117_v22 = vld [vmem:[%s464_s3 + $0x48] sm:$0xff]  ;;  %s209_s12 = sshll.u32 %s349_s11, 4  ;;  %vm201_vm2 = vcmask 130048   ;;  %s210_s12 = int_to_ptr.vmem [resolvable:$true] %s209_s12 }
   0x9   :  { %299 = vmatpush3.bf16.msra.mxu1 %v298_v13  ;;  %v304_v20 = vpack.c.bf16 %v115_v19, %v114_v18  ;;  %v307_v23 = vpack.c.bf16 %v117_v22, %v116_v21  ;;  %v118_v24 = vld [vmem:[%s464_s3 + $0x50] sm:$0xff]  ;;  %v119_v25 = vld [vmem:[%s464_s3 + $0x58] sm:$0xff]  ;;  %v120_v27 = vld [vmem:[%s464_s3 + $0x60] sm:$0xff]  ;;  %p327_p1 = scmp.lt.s32.totalorder %s210_s12, %s210_s12 }
   0xa   :  { %300 = vmatprep.subr.bf16.mxu1 %v346_v3  ;;  %v310_v26 = vpack.c.bf16 %v119_v25, %v118_v24  ;;  %v121_v28 = vld [vmem:[%s464_s3 + $0x68] sm:$0xff]  ;;  %v122_v30 = vld [vmem:[%s464_s3 + $0x70] sm:$0xff]  ;;  %v123_v31 = vld [vmem:[%s464_s3 + $0x78] sm:$0xff]  ;;  %s322_s3 = scalar_lea.vmem %s210_s12, 128 }
   0xb   :  { %251 = vmatmul.mubr.msk.f32.vlgmr.msra.gmra.mrb[0].mxu0 %vm33_vm1, %v21_v16  ;;  %v313_v29 = vpack.c.bf16 %v121_v28, %v120_v27  ;;  %v316_v32 = vpack.c.bf16 %v123_v31, %v122_v30  ;;  %v217_v33 = vld [vmem:[%s463_s2] ss:$0 sm:$0xff]  ;;  %p323_p0 = scmp.ne.s32.totalorder %s210_s12, %s322_s3  ;;  %p328_p2 = scmp.lt.s32.totalorder %s322_s3, %s322_s3 }
   0xc   :  { %v219_v38 = vld [vmem:[%s465_s4] ss:$0 sm:$0xff] }
   0xd   :  { %302 = vmatpush3.bf16.msra.mxu1 %v301_v17  ;;  %p329_p3 = por %p328_p2, %p327_p1 }
   0xe   :  { %303 = vmatprep.subr.bf16.mxu1 %v346_v3 }
   0xf   :  { %p330_p4 = pnand %p329_p3, %p323_p0 }
  0x11   :  { %305 = vmatpush3.bf16.msra.mxu1 %v304_v20 }
  0x12   :  { %306 = vmatprep.subr.bf16.mxu1 %v346_v3 }
  0x15   :  { %308 = vmatpush3.bf16.msra.mxu1 %v307_v23 }
  0x16   :  { %309 = vmatprep.subr.bf16.mxu1 %v346_v3 }
  0x19   :  { %311 = vmatpush3.bf16.msra.mxu1 %v310_v26 }
  0x1a   :  { %312 = vmatprep.subr.bf16.mxu1 %v346_v3 }
  0x1d   :  { %314 = vmatpush3.bf16.msra.mxu1 %v313_v29 }
  0x1e   :  { %315 = vmatprep.subr.bf16.mxu1 %v346_v3 }
  0x21   :  { %317 = vmatpush3.bf16.msra.mxu1 %v316_v32 }
  0xde   :  { %v103_v34 = vpop.f32.mrb[0].mxu0 }
  0xdf   :  { %v104_v35 = vadd.f32 %v217_v33, %v103_v34  ;;  %v252_v36 = vpop.f32.mrb[1].mxu0 }
  0xe1   :  { %v107_v37 = vmax.f32 %v104_v35, 0.0 }
  0xe3   :  { %286 = vmatmul.mubr.f32.vlgmr.msra.gmra.mrb[0].mxu1 %v107_v37 }
 0x1b6   :  { %v197_v39 = vpop.f32.mrb[0].mxu1 }
 0x1b7   :  { %v198_v40 = vadd.f32 %v219_v38, %v197_v39  ;;  %v287_v41 = vpop.f32.mrb[1].mxu1 }
 0x1b9   :  { %202 = vst.msk [vmem:[#allocation2] sm:$0xff] %vm201_vm2, %v198_v40 }
 0x1ba   :  { %333 = shalt.err (!%p330_p4)
}
 0x1bb   :  { %s334_s14 = scalar_lea.hbm %s466_s5, 128 }
 0x1bc   :  { %p335_p5 = scmp.ne.s32.totalorder %s466_s5, %s334_s14  ;;  %p338_p6 = scmp.lt.u32.totalorder %s334_s14, %s466_s5 }
 0x1be   :  { %p340_p7 = pnand %p338_p6, %p335_p5 }
 0x1c0   :  { %343 = shalt.err (!%p340_p7)
}
 0x1c1   :  { %212 = dma.vmem_to_hbm [thread:$0]  %s210_s12, 128, %s466_s5, [#allocation3]  }
 0x1c2   :  { %344 = dma.done.wait [#allocation3], 128  }
 0x1c3   :  { %345 = vsyncadd [#allocation3], 4294967168 }
 0x1c4   :  { %216 = vsyncpa [#allocation3], 1 }

</bundles_post_ra>
